<compile_context>
chip_gen: v5e
topology: v5e:2x2
jax: 0.10.0
libtpu: 0.0.40
codegen_flags: <defaults>
</compile_context>

<pallas_src>
import functools

import jax
import jax.numpy as jnp
from jax.experimental import pallas as pl
from jax.experimental.pallas import tpu as pltpu

_LANES = 128


def _cdiv(a, b):
    return -(-a // b)


def _focal_dice_sums_kernel(pred_ref, tgt_ref,
                            it_ref, sp_ref, st_ref, fl_ref,
                            acc_it, acc_sp, acc_st, acc_fl,
                            *, alpha, gamma, pos_weight,
                            n_valid, steps, tile_rows, needs_mask):
    c = pl.program_id(0)          # parallel (core) slice
    i = pl.program_id(1)          # reduction step within this slice

    @pl.when(i == 0)
    def _():
        acc_it[...] = jnp.zeros_like(acc_it)
        acc_sp[...] = jnp.zeros_like(acc_sp)
        acc_st[...] = jnp.zeros_like(acc_st)
        acc_fl[...] = jnp.zeros_like(acc_fl)

    x = pred_ref[...].astype(jnp.float32)
    t = tgt_ref[...].astype(jnp.float32)

    # Stable softplus(-x); sigmoid derived from it (saves one exp + one div).
    sp_neg_x = jnp.maximum(-x, 0.0) + jnp.log(1.0 + jnp.exp(-jnp.abs(x)))
    p = jnp.exp(-sp_neg_x)                                    # sigmoid(x)

    # BCE-with-logits (PyTorch pos_weight form):
    #   bce = (1 - t) * x + (1 + (pos_weight - 1) * t) * softplus(-x)
    bce = (1.0 - t) * x + (1.0 + (pos_weight - 1.0) * t) * sp_neg_x
    pt = jnp.exp(-bce)
    one_m_pt = 1.0 - pt

    g = float(gamma)
    if g == 2.0:
        mod = one_m_pt * one_m_pt
    elif g == 1.0:
        mod = one_m_pt
    elif g == 0.0:
        mod = jnp.ones_like(one_m_pt)
    elif g.is_integer() and g > 0:
        mod = one_m_pt
        for _ in range(int(g) - 1):
            mod = mod * one_m_pt
    else:
        mod = jnp.power(jnp.maximum(one_m_pt, 0.0), g)
    focal = alpha * mod * bce

    it_term = p * t
    sp_term = p
    st_term = t
    fl_term = focal

    if needs_mask:
        # Mask the ragged tail (and any duplicated overshoot tile) against the
        # static valid-element count; pad / duplicate contents contribute zero.
        row_ids = jax.lax.broadcasted_iota(jnp.int32, x.shape, 0)
        lane_ids = jax.lax.broadcasted_iota(jnp.int32, x.shape, 1)
        base = (c * steps + i) * (tile_rows * _LANES)
        gidx = base + row_ids * _LANES + lane_ids
        m = (gidx < n_valid).astype(jnp.float32)
        it_term = m * it_term
        sp_term = m * sp_term
        st_term = m * st_term
        fl_term = m * fl_term

    # Element-wise (VALU-only) accumulation; no per-step reductions or stores.
    acc_it[...] += it_term
    acc_sp[...] += sp_term
    acc_st[...] += st_term
    acc_fl[...] += fl_term

    @pl.when(i == pl.num_programs(1) - 1)
    def _():
        it_ref[...] = jnp.sum(acc_it[...]).reshape(1, 1, 1)
        sp_ref[...] = jnp.sum(acc_sp[...]).reshape(1, 1, 1)
        st_ref[...] = jnp.sum(acc_st[...]).reshape(1, 1, 1)
        fl_ref[...] = jnp.sum(acc_fl[...]).reshape(1, 1, 1)


def focal_dice_loss(pred, target, *, alpha=1.0, gamma=2.0, weight=20.0,
                    max_tile_rows=1024, num_parallel=2):
    """Equivalent of FocalDiceLoss(alpha, gamma, logits=True, weight, reduce=True)."""
    assert pred.shape == target.shape
    n_elems = pred.size

    pred_f = pred.reshape(-1).astype(jnp.float32)
    tgt_f = target.reshape(-1).astype(jnp.float32)

    # Lane-dense (rows, 128) layout; rows rounded up to 8 sublanes.
    rows = _cdiv(n_elems, _LANES)
    rows8 = _cdiv(rows, 8) * 8
    # Balance tiles so padding beyond sublane rounding is at most 8 rows/tile.
    num_tiles = _cdiv(rows8, max_tile_rows)
    tile_rows = _cdiv(_cdiv(rows8, num_tiles), 8) * 8
    padded_rows = num_tiles * tile_rows

    pad = padded_rows * _LANES - n_elems
    if pad:
        # Only materialized when the flat size doesn't tile exactly; the pad
        # value doesn't matter because the tail is masked inside the kernel.
        pred_f = jnp.pad(pred_f, (0, pad))
        tgt_f = jnp.pad(tgt_f, (0, pad))
    pred2 = pred_f.reshape(padded_rows, _LANES)
    tgt2 = tgt_f.reshape(padded_rows, _LANES)

    # Shard tiles across (up to) two TensorCores for v7x.
    num_par = num_parallel if num_tiles >= num_parallel else 1
    steps = _cdiv(num_tiles, num_par)
    needs_mask = (pad > 0) or (num_par * steps != num_tiles)

    kernel = functools.partial(
        _focal_dice_sums_kernel,
        alpha=float(alpha), gamma=float(gamma), pos_weight=float(weight),
        n_valid=int(n_elems), steps=int(steps), tile_rows=int(tile_rows),
        needs_mask=bool(needs_mask))

    def in_map(c, i):
        # Clamp so an overshoot step (odd tile count split over 2 cores)
        # re-reads the last tile; its contribution is masked out in-kernel.
        return (jnp.minimum(c * steps + i, num_tiles - 1), 0)

    in_spec = pl.BlockSpec((tile_rows, _LANES), in_map)
    scalar_shape = jax.ShapeDtypeStruct((num_par, 1, 1), jnp.float32)
    scalar_spec = pl.BlockSpec((1, 1, 1), lambda c, i: (c, 0, 0))

    inter, sum_p, sum_t, focal_sum = pl.pallas_call(
        kernel,
        out_shape=(scalar_shape, scalar_shape, scalar_shape, scalar_shape),
        grid_spec=pltpu.PrefetchScalarGridSpec(
            num_scalar_prefetch=0,
            grid=(num_par, steps),
            in_specs=[in_spec, in_spec],
            out_specs=(scalar_spec, scalar_spec, scalar_spec, scalar_spec),
            scratch_shapes=[pltpu.VMEM((tile_rows, _LANES), jnp.float32)
                            for _ in range(4)]),
        compiler_params=pltpu.CompilerParams(
            dimension_semantics=("parallel", "arbitrary"),
            vmem_limit_bytes=32 * 1024 * 1024),
    )(pred2, tgt2)

    inter = jnp.sum(inter)
    sum_p = jnp.sum(sum_p)
    sum_t = jnp.sum(sum_t)
    focal_mean = jnp.sum(focal_sum) / jnp.float32(n_elems)

    dice = 1.0 - 2.0 * inter / (sum_p + sum_t + 1e-07)
    return dice + focal_mean


def _reference_focal_dice(pred, target, *, alpha=1.0, gamma=2.0, weight=20.0):
    # Pure-JAX reference mirroring the PyTorch module (for sanity checking).
    x = pred.astype(jnp.float32)
    t = target.astype(jnp.float32)
    p = jax.nn.sigmoid(x)
    inter = jnp.sum(p * t)
    union = jnp.sum(p) + jnp.sum(t) + 1e-07
    dice = 1.0 - 2.0 * inter / union
    sp_neg_x = jnp.maximum(-x, 0.0) + jnp.log1p(jnp.exp(-jnp.abs(x)))
    bce = (1.0 - t) * x + (1.0 + (weight - 1.0) * t) * sp_neg_x
    pt = jnp.exp(-bce)
    focal = jnp.mean(alpha * (1.0 - pt) ** gamma * bce)
    return dice + focal


if __name__ == "__main__":
    key = jax.random.PRNGKey(0)
    k_pred, k_tgt = jax.random.split(key)

    # NCHW logits and binary targets, matching a UNet segmentation head.
    pred = jax.random.normal(k_pred, (2, 4, 16, 16), dtype=jnp.float32) * 2.0
    target = (jax.random.uniform(k_tgt, (2, 4, 16, 16)) > 0.5).astype(jnp.float32)

    loss = focal_dice_loss(pred, target)
    loss = jax.block_until_ready(loss)
    ref = _reference_focal_dice(pred, target)
    assert jnp.allclose(loss, ref, rtol=1e-5, atol=1e-5), (loss, ref)

    # Extra check: multi-tile + 2-way parallel split path (exact tiling).
    k1, k2 = jax.random.split(jax.random.PRNGKey(1))
    pred_b = jax.random.normal(k1, (4, 8, 128, 128), dtype=jnp.float32) * 2.0
    target_b = (jax.random.uniform(k2, (4, 8, 128, 128)) > 0.5).astype(jnp.float32)
    loss_b = jax.block_until_ready(focal_dice_loss(pred_b, target_b))
    ref_b = _reference_focal_dice(pred_b, target_b)
    assert jnp.allclose(loss_b, ref_b, rtol=1e-4, atol=1e-4), (loss_b, ref_b)

    # Extra check: ragged tail path (in-kernel masking).
    k3, k4 = jax.random.split(jax.random.PRNGKey(2))
    pred_c = jax.random.normal(k3, (2, 3, 37, 53), dtype=jnp.float32) * 2.0
    target_c = (jax.random.uniform(k4, (2, 3, 37, 53)) > 0.5).astype(jnp.float32)
    loss_c = jax.block_until_ready(focal_dice_loss(pred_c, target_c))
    ref_c = _reference_focal_dice(pred_c, target_c)
    assert jnp.allclose(loss_c, ref_c, rtol=1e-5, atol=1e-5), (loss_c, ref_c)

    print("KERNEL_OK")
</pallas_src>

<mosaic_0001>
module attributes {stable_mosaic.version = 11 : i64} {
  func.func @_focal_dice_sums_kernel(%arg0: i32, %arg1: i32, %arg2: memref<16x128xf32, #tpu.memory_space<vmem>>, %arg3: memref<16x128xf32, #tpu.memory_space<vmem>>, %arg4: memref<1x1x1xf32, #tpu.memory_space<vmem>>, %arg5: memref<1x1x1xf32, #tpu.memory_space<vmem>>, %arg6: memref<1x1x1xf32, #tpu.memory_space<vmem>>, %arg7: memref<1x1x1xf32, #tpu.memory_space<vmem>>, %arg8: memref<16x128xf32, #tpu.memory_space<vmem>>, %arg9: memref<16x128xf32, #tpu.memory_space<vmem>>, %arg10: memref<16x128xf32, #tpu.memory_space<vmem>>, %arg11: memref<16x128xf32, #tpu.memory_space<vmem>>) attributes {dimension_semantics = [#tpu.dimension_semantics<parallel>, #tpu.dimension_semantics<arbitrary>], iteration_bounds = array<i64: 1, 1>, scalar_prefetch = 0 : i64, scratch_operands = 4 : i64, tpu.core_type = #tpu.core_type<tc>, window_params = [{transform_indices = @transform_0, window_bounds = array<i64: 16, 128>}, {transform_indices = @transform_1, window_bounds = array<i64: 16, 128>}, {transform_indices = @transform_2, window_bounds = array<i64: 1, 1, 1>}, {transform_indices = @transform_3, window_bounds = array<i64: 1, 1, 1>}, {transform_indices = @transform_4, window_bounds = array<i64: 1, 1, 1>}, {transform_indices = @transform_5, window_bounds = array<i64: 1, 1, 1>}]} {
    %c0_i32 = arith.constant 0 : i32
    %0 = arith.cmpi eq, %arg1, %c0_i32 : i32
    %1 = arith.extui %0 : i1 to i32
    %c0_i32_0 = arith.constant 0 : i32
    %2 = arith.cmpi ne, %1, %c0_i32_0 : i32
    scf.if %2 {
      %cst_32 = arith.constant 0.000000e+00 : f32
      %54 = vector.broadcast %cst_32 : f32 to vector<16x128xf32>
      %c0_33 = arith.constant 0 : index
      %c0_34 = arith.constant 0 : index
      %55 = vector.load %arg8[%c0_33, %c0_34] : memref<16x128xf32, #tpu.memory_space<vmem>>, vector<16x128xf32>
      tpu.vector_store %arg8[%c0_33, %c0_34], %54 {strides = array<i32>} : memref<16x128xf32, #tpu.memory_space<vmem>>, vector<16x128xf32>,
      %cst_35 = arith.constant 0.000000e+00 : f32
      %56 = vector.broadcast %cst_35 : f32 to vector<16x128xf32>
      %c0_36 = arith.constant 0 : index
      %c0_37 = arith.constant 0 : index
      %57 = vector.load %arg9[%c0_36, %c0_37] : memref<16x128xf32, #tpu.memory_space<vmem>>, vector<16x128xf32>
      tpu.vector_store %arg9[%c0_36, %c0_37], %56 {strides = array<i32>} : memref<16x128xf32, #tpu.memory_space<vmem>>, vector<16x128xf32>,
      %cst_38 = arith.constant 0.000000e+00 : f32
      %58 = vector.broadcast %cst_38 : f32 to vector<16x128xf32>
      %c0_39 = arith.constant 0 : index
      %c0_40 = arith.constant 0 : index
      %59 = vector.load %arg10[%c0_39, %c0_40] : memref<16x128xf32, #tpu.memory_space<vmem>>, vector<16x128xf32>
      tpu.vector_store %arg10[%c0_39, %c0_40], %58 {strides = array<i32>} : memref<16x128xf32, #tpu.memory_space<vmem>>, vector<16x128xf32>,
      %cst_41 = arith.constant 0.000000e+00 : f32
      %60 = vector.broadcast %cst_41 : f32 to vector<16x128xf32>
      %c0_42 = arith.constant 0 : index
      %c0_43 = arith.constant 0 : index
      %61 = vector.load %arg11[%c0_42, %c0_43] : memref<16x128xf32, #tpu.memory_space<vmem>>, vector<16x128xf32>
      tpu.vector_store %arg11[%c0_42, %c0_43], %60 {strides = array<i32>} : memref<16x128xf32, #tpu.memory_space<vmem>>, vector<16x128xf32>,
    } else {
    }
    %c0 = arith.constant 0 : index
    %c0_1 = arith.constant 0 : index
    %3 = vector.load %arg2[%c0, %c0_1] : memref<16x128xf32, #tpu.memory_space<vmem>>, vector<16x128xf32>
    %c0_2 = arith.constant 0 : index
    %c0_3 = arith.constant 0 : index
    %4 = vector.load %arg3[%c0_2, %c0_3] : memref<16x128xf32, #tpu.memory_space<vmem>>, vector<16x128xf32>
    %cst = arith.constant 0.000000e+00 : f32
    %5 = vector.broadcast %cst : f32 to vector<16x128xf32>
    %6 = arith.subf %5, %3 : vector<16x128xf32>
    %cst_4 = arith.constant 0.000000e+00 : f32
    %7 = vector.broadcast %cst_4 : f32 to vector<16x128xf32>
    %8 = arith.maximumf %6, %7 : vector<16x128xf32>
    %9 = math.absf %3 : vector<16x128xf32>
    %cst_5 = arith.constant 0.000000e+00 : f32
    %10 = vector.broadcast %cst_5 : f32 to vector<16x128xf32>
    %11 = arith.subf %10, %9 : vector<16x128xf32>
    %12 = math.exp %11 : vector<16x128xf32>
    %cst_6 = arith.constant 1.000000e+00 : f32
    %13 = vector.broadcast %cst_6 : f32 to vector<16x128xf32>
    %14 = arith.addf %13, %12 : vector<16x128xf32>
    %15 = math.log %14 : vector<16x128xf32>
    %16 = arith.addf %8, %15 : vector<16x128xf32>
    %cst_7 = arith.constant 0.000000e+00 : f32
    %17 = vector.broadcast %cst_7 : f32 to vector<16x128xf32>
    %18 = arith.subf %17, %16 : vector<16x128xf32>
    %19 = math.exp %18 : vector<16x128xf32>
    %cst_8 = arith.constant 1.000000e+00 : f32
    %20 = vector.broadcast %cst_8 : f32 to vector<16x128xf32>
    %21 = arith.subf %20, %4 : vector<16x128xf32>
    %22 = arith.mulf %21, %3 : vector<16x128xf32>
    %cst_9 = arith.constant 1.900000e+01 : f32
    %23 = vector.broadcast %cst_9 : f32 to vector<16x128xf32>
    %24 = arith.mulf %23, %4 : vector<16x128xf32>
    %cst_10 = arith.constant 1.000000e+00 : f32
    %25 = vector.broadcast %cst_10 : f32 to vector<16x128xf32>
    %26 = arith.addf %25, %24 : vector<16x128xf32>
    %27 = arith.mulf %26, %16 : vector<16x128xf32>
    %28 = arith.addf %22, %27 : vector<16x128xf32>
    %cst_11 = arith.constant 0.000000e+00 : f32
    %29 = vector.broadcast %cst_11 : f32 to vector<16x128xf32>
    %30 = arith.subf %29, %28 : vector<16x128xf32>
    %31 = math.exp %30 : vector<16x128xf32>
    %cst_12 = arith.constant 1.000000e+00 : f32
    %32 = vector.broadcast %cst_12 : f32 to vector<16x128xf32>
    %33 = arith.subf %32, %31 : vector<16x128xf32>
    %34 = arith.mulf %33, %33 : vector<16x128xf32>
    %cst_13 = arith.constant 1.000000e+00 : f32
    %35 = vector.broadcast %cst_13 : f32 to vector<16x128xf32>
    %36 = arith.mulf %35, %34 : vector<16x128xf32>
    %37 = arith.mulf %36, %28 : vector<16x128xf32>
    %38 = arith.mulf %19, %4 : vector<16x128xf32>
    %c0_14 = arith.constant 0 : index
    %c0_15 = arith.constant 0 : index
    %39 = vector.load %arg8[%c0_14, %c0_15] : memref<16x128xf32, #tpu.memory_space<vmem>>, vector<16x128xf32>
    %40 = arith.addf %39, %38 : vector<16x128xf32>
    %c0_16 = arith.constant 0 : index
    %c0_17 = arith.constant 0 : index
    %41 = vector.load %arg8[%c0_16, %c0_17] : memref<16x128xf32, #tpu.memory_space<vmem>>, vector<16x128xf32>
    tpu.vector_store %arg8[%c0_16, %c0_17], %40 {strides = array<i32>} : memref<16x128xf32, #tpu.memory_space<vmem>>, vector<16x128xf32>,
    %c0_18 = arith.constant 0 : index
    %c0_19 = arith.constant 0 : index
    %42 = vector.load %arg9[%c0_18, %c0_19] : memref<16x128xf32, #tpu.memory_space<vmem>>, vector<16x128xf32>
    %43 = arith.addf %42, %19 : vector<16x128xf32>
    %c0_20 = arith.constant 0 : index
    %c0_21 = arith.constant 0 : index
    %44 = vector.load %arg9[%c0_20, %c0_21] : memref<16x128xf32, #tpu.memory_space<vmem>>, vector<16x128xf32>
    tpu.vector_store %arg9[%c0_20, %c0_21], %43 {strides = array<i32>} : memref<16x128xf32, #tpu.memory_space<vmem>>, vector<16x128xf32>,
    %c0_22 = arith.constant 0 : index
    %c0_23 = arith.constant 0 : index
    %45 = vector.load %arg10[%c0_22, %c0_23] : memref<16x128xf32, #tpu.memory_space<vmem>>, vector<16x128xf32>
    %46 = arith.addf %45, %4 : vector<16x128xf32>
    %c0_24 = arith.constant 0 : index
    %c0_25 = arith.constant 0 : index
    %47 = vector.load %arg10[%c0_24, %c0_25] : memref<16x128xf32, #tpu.memory_space<vmem>>, vector<16x128xf32>
    tpu.vector_store %arg10[%c0_24, %c0_25], %46 {strides = array<i32>} : memref<16x128xf32, #tpu.memory_space<vmem>>, vector<16x128xf32>,
    %c0_26 = arith.constant 0 : index
    %c0_27 = arith.constant 0 : index
    %48 = vector.load %arg11[%c0_26, %c0_27] : memref<16x128xf32, #tpu.memory_space<vmem>>, vector<16x128xf32>
    %49 = arith.addf %48, %37 : vector<16x128xf32>
    %c0_28 = arith.constant 0 : index
    %c0_29 = arith.constant 0 : index
    %50 = vector.load %arg11[%c0_28, %c0_29] : memref<16x128xf32, #tpu.memory_space<vmem>>, vector<16x128xf32>
    tpu.vector_store %arg11[%c0_28, %c0_29], %49 {strides = array<i32>} : memref<16x128xf32, #tpu.memory_space<vmem>>, vector<16x128xf32>,
    %c0_i32_30 = arith.constant 0 : i32
    %51 = arith.cmpi eq, %arg1, %c0_i32_30 : i32
    %52 = arith.extui %51 : i1 to i32
    %c0_i32_31 = arith.constant 0 : i32
    %53 = arith.cmpi ne, %52, %c0_i32_31 : i32
    scf.if %53 {
      %c0_32 = arith.constant 0 : index
      %c0_33 = arith.constant 0 : index
      %54 = vector.load %arg8[%c0_32, %c0_33] : memref<16x128xf32, #tpu.memory_space<vmem>>, vector<16x128xf32>
      %55 = vector.shape_cast %54 : vector<16x128xf32> to vector<1x16x128xf32>
      %cst_34 = arith.constant dense<0.000000e+00> : vector<1xf32>
      %56 = vector.multi_reduction <add>, %55, %cst_34 [1, 2] : vector<1x16x128xf32> to vector<1xf32>
      %57 = vector.shape_cast %56 : vector<1xf32> to vector<1x1x1xf32>
      %58 = vector.extract %57[0, 0, 0] : f32 from vector<1x1x1xf32>
      %59 = vector.broadcast %58 : f32 to vector<1x1x1xf32>
      %c0_35 = arith.constant 0 : index
      %c0_36 = arith.constant 0 : index
      %c0_37 = arith.constant 0 : index
      %60 = vector.load %arg4[%c0_35, %c0_36, %c0_37] : memref<1x1x1xf32, #tpu.memory_space<vmem>>, vector<1x1x1xf32>
      tpu.vector_store %arg4[%c0_35, %c0_36, %c0_37], %59 {strides = array<i32>} : memref<1x1x1xf32, #tpu.memory_space<vmem>>, vector<1x1x1xf32>,
      %c0_38 = arith.constant 0 : index
      %c0_39 = arith.constant 0 : index
      %61 = vector.load %arg9[%c0_38, %c0_39] : memref<16x128xf32, #tpu.memory_space<vmem>>, vector<16x128xf32>
      %62 = vector.shape_cast %61 : vector<16x128xf32> to vector<1x16x128xf32>
      %cst_40 = arith.constant dense<0.000000e+00> : vector<1xf32>
      %63 = vector.multi_reduction <add>, %62, %cst_40 [1, 2] : vector<1x16x128xf32> to vector<1xf32>
      %64 = vector.shape_cast %63 : vector<1xf32> to vector<1x1x1xf32>
      %65 = vector.extract %64[0, 0, 0] : f32 from vector<1x1x1xf32>
      %66 = vector.broadcast %65 : f32 to vector<1x1x1xf32>
      %c0_41 = arith.constant 0 : index
      %c0_42 = arith.constant 0 : index
      %c0_43 = arith.constant 0 : index
      %67 = vector.load %arg5[%c0_41, %c0_42, %c0_43] : memref<1x1x1xf32, #tpu.memory_space<vmem>>, vector<1x1x1xf32>
      tpu.vector_store %arg5[%c0_41, %c0_42, %c0_43], %66 {strides = array<i32>} : memref<1x1x1xf32, #tpu.memory_space<vmem>>, vector<1x1x1xf32>,
      %c0_44 = arith.constant 0 : index
      %c0_45 = arith.constant 0 : index
      %68 = vector.load %arg10[%c0_44, %c0_45] : memref<16x128xf32, #tpu.memory_space<vmem>>, vector<16x128xf32>
      %69 = vector.shape_cast %68 : vector<16x128xf32> to vector<1x16x128xf32>
      %cst_46 = arith.constant dense<0.000000e+00> : vector<1xf32>
      %70 = vector.multi_reduction <add>, %69, %cst_46 [1, 2] : vector<1x16x128xf32> to vector<1xf32>
      %71 = vector.shape_cast %70 : vector<1xf32> to vector<1x1x1xf32>
      %72 = vector.extract %71[0, 0, 0] : f32 from vector<1x1x1xf32>
      %73 = vector.broadcast %72 : f32 to vector<1x1x1xf32>
      %c0_47 = arith.constant 0 : index
      %c0_48 = arith.constant 0 : index
      %c0_49 = arith.constant 0 : index
      %74 = vector.load %arg6[%c0_47, %c0_48, %c0_49] : memref<1x1x1xf32, #tpu.memory_space<vmem>>, vector<1x1x1xf32>
      tpu.vector_store %arg6[%c0_47, %c0_48, %c0_49], %73 {strides = array<i32>} : memref<1x1x1xf32, #tpu.memory_space<vmem>>, vector<1x1x1xf32>,
      %c0_50 = arith.constant 0 : index
      %c0_51 = arith.constant 0 : index
      %75 = vector.load %arg11[%c0_50, %c0_51] : memref<16x128xf32, #tpu.memory_space<vmem>>, vector<16x128xf32>
      %76 = vector.shape_cast %75 : vector<16x128xf32> to vector<1x16x128xf32>
      %cst_52 = arith.constant dense<0.000000e+00> : vector<1xf32>
      %77 = vector.multi_reduction <add>, %76, %cst_52 [1, 2] : vector<1x16x128xf32> to vector<1xf32>
      %78 = vector.shape_cast %77 : vector<1xf32> to vector<1x1x1xf32>
      %79 = vector.extract %78[0, 0, 0] : f32 from vector<1x1x1xf32>
      %80 = vector.broadcast %79 : f32 to vector<1x1x1xf32>
      %c0_53 = arith.constant 0 : index
      %c0_54 = arith.constant 0 : index
      %c0_55 = arith.constant 0 : index
      %81 = vector.load %arg7[%c0_53, %c0_54, %c0_55] : memref<1x1x1xf32, #tpu.memory_space<vmem>>, vector<1x1x1xf32>
      tpu.vector_store %arg7[%c0_53, %c0_54, %c0_55], %80 {strides = array<i32>} : memref<1x1x1xf32, #tpu.memory_space<vmem>>, vector<1x1x1xf32>,
    } else {
    }
    return
  }
  func.func @transform_0(%arg0: i32, %arg1: i32) -> (i32, i32) {
    %c1_i32 = arith.constant 1 : i32
    %0 = arith.muli %arg0, %c1_i32 : i32
    %1 = arith.addi %0, %arg1 : i32
    %c0_i32 = arith.constant 0 : i32
    %2 = arith.minsi %1, %c0_i32 : i32
    %c0_i32_0 = arith.constant 0 : i32
    %c0_i32_1 = arith.constant 0 : i32
    return %2, %c0_i32_0 : i32, i32
  }
  func.func @transform_1(%arg0: i32, %arg1: i32) -> (i32, i32) {
    %c1_i32 = arith.constant 1 : i32
    %0 = arith.muli %arg0, %c1_i32 : i32
    %1 = arith.addi %0, %arg1 : i32
    %c0_i32 = arith.constant 0 : i32
    %2 = arith.minsi %1, %c0_i32 : i32
    %c0_i32_0 = arith.constant 0 : i32
    %c0_i32_1 = arith.constant 0 : i32
    return %2, %c0_i32_0 : i32, i32
  }
  func.func @transform_2(%arg0: i32, %arg1: i32) -> (i32, i32, i32) {
    %c0_i32 = arith.constant 0 : i32
    %c0_i32_0 = arith.constant 0 : i32
    %c0_i32_1 = arith.constant 0 : i32
    return %arg0, %c0_i32, %c0_i32_0 : i32, i32, i32
  }
  func.func @transform_3(%arg0: i32, %arg1: i32) -> (i32, i32, i32) {
    %c0_i32 = arith.constant 0 : i32
    %c0_i32_0 = arith.constant 0 : i32
    %c0_i32_1 = arith.constant 0 : i32
    return %arg0, %c0_i32, %c0_i32_0 : i32, i32, i32
  }
  func.func @transform_4(%arg0: i32, %arg1: i32) -> (i32, i32, i32) {
    %c0_i32 = arith.constant 0 : i32
    %c0_i32_0 = arith.constant 0 : i32
    %c0_i32_1 = arith.constant 0 : i32
    return %arg0, %c0_i32, %c0_i32_0 : i32, i32, i32
  }
  func.func @transform_5(%arg0: i32, %arg1: i32) -> (i32, i32, i32) {
    %c0_i32 = arith.constant 0 : i32
    %c0_i32_0 = arith.constant 0 : i32
    %c0_i32_1 = arith.constant 0 : i32
    return %arg0, %c0_i32, %c0_i32_0 : i32, i32, i32
  }
}

</mosaic_0001>

<bundles_post_ra>
// kernel: tpu_custom_call.1
= control target key start
LH: loop header
LB: loop body
LE: loop exit
PB: predicated region body
PF: predicated region fallthrough
CT: control target
= control target key end

     0   :  { %11 = vsyncpa [#allocation7], 0  ;;  %s537_s0 = inlined_call_operand.hbm [shape: f32[16,128], index: 0, kind: input, shape index: {}]   ;;  %s538_s1 = inlined_call_operand.hbm [shape: f32[16,128], index: 1, kind: input, shape index: {}]   ;;  %s539_s2 = inlined_call_operand.hbm [shape: f32[1,1,1], index: 2, kind: output, shape index: {0}]   ;;  %s540_s3 = inlined_call_operand.hbm [shape: f32[1,1,1], index: 3, kind: output, shape index: {1}]   ;;  %s541_s4 = inlined_call_operand.hbm [shape: f32[1,1,1], index: 4, kind: output, shape index: {2}]   ;;  %s542_s5 = inlined_call_operand.hbm [shape: f32[1,1,1], index: 5, kind: output, shape index: {3}]  }
   0x1   :  { %12 = vsyncpa [#allocation10], 0 }
   0x2   :  { %13 = vsyncpa [#allocation8], 0 }
   0x3   :  { %14 = vsyncpa [#allocation13], 0 }
   0x4   :  { %15 = vsyncpa [#allocation16], 0  ;;  %s26_s20 = sshll.u32 %s537_s0, 4  ;;  %s477_s21 = smov [#allocation6]   ;;  %s27_s20 = int_to_ptr.hbm [resolvable:$true] %s26_s20 }
   0x5   :  { %s28_s22 = sshll.u32 %s477_s21, 4  ;;  %s45_s25 = sshll.u32 %s538_s1, 4  ;;  %s29_s22 = int_to_ptr.vmem [resolvable:$true] %s28_s22  ;;  %s46_s25 = int_to_ptr.hbm [resolvable:$true] %s45_s25 }
   0x6   :  { %s478_s26 = smov 128   ;;  %s479_s27 = smov 8  }
   0x7   :  { %34 = dma.hbm_to_vmem [thread:$0]  %s27_s20, 256, %s29_s22, [#allocation7], %s478_s26, %s478_s26, %s479_s27  }
   0x8   :  { %s480_s28 = smov [#allocation9]  }
   0x9   :  { %s47_s29 = sshll.u32 %s480_s28, 4  ;;  %s48_s29 = int_to_ptr.vmem [resolvable:$true] %s47_s29 }
   0xa   :  { %53 = dma.hbm_to_vmem [thread:$0]  %s46_s25, 256, %s48_s29, [#allocation10], %s478_s26, %s478_s26, %s479_s27  }
   0xb   :  { %467 = dma.done.wait [#allocation7], 256  }
   0xc   :  { %468 = vsyncadd [#allocation7], 4294967040 }
   0xd   :  { %469 = dma.done.wait [#allocation10], 256  }
   0xe   :  { %470 = vsyncadd [#allocation10], 4294967040  ;;  %v84_v0 = vld [vmem:[#allocation9] sm:$0xff]  ;;  %v85_v1 = vld [vmem:[#allocation9 + $0x8] sm:$0xff]  ;;  %s229_s30 = sshll.u32 %s539_s2, 4  ;;  %s481_s6 = smov [#allocation11]   ;;  %s230_s30 = int_to_ptr.hbm [resolvable:$true] %s229_s30 }
   0xf   :  { %v82_v2 = vld [vmem:[#allocation6] sm:$0xff]  ;;  %v196_v3 = vadd.f32 %v85_v1, %v84_v0  ;;  %v83_v4 = vld [vmem:[#allocation6 + $0x8] sm:$0xff]  ;;  %v116_v17 = vmul.f32 19.0, %v84_v0  ;;  %v117_v18 = vmul.f32 19.0, %v85_v1  ;;  %v112_v19 = vsub.f32 1.0, %v84_v0  ;;  %s227_s7 = sshll.u32 %s481_s6, 4  ;;  %s228_s7 = int_to_ptr.vmem [resolvable:$true] %s227_s7 }
  0x10   :  { %v90_v5 = vand.u32 2147483647, %v82_v2  ;;  %v91_v6 = vand.u32 2147483647, %v83_v4  ;;  %v86_v15 = vsub.f32 0.0, %v82_v2  ;;  %v87_v16 = vsub.f32 0.0, %v83_v4 }
  0x11   :  { %197 = vadd.xlane.f32.xlu1 %v196_v3  ;;  %v113_v22 = vsub.f32 1.0, %v85_v1  ;;  %v118_v25 = vadd.f32 1.0, %v116_v17  ;;  %v119_v27 = vadd.f32 1.0, %v117_v18  ;;  %v114_v30 = vmul.f32 %v112_v19, %v82_v2  ;;  %s482_s9 = smov [#allocation12]   ;;  %s240_s13 = sshll.u32 %s540_s3, 4  ;;  %s241_s13 = int_to_ptr.hbm [resolvable:$true] %s240_s13 }
  0x12   :  { %v92_v7 = vsub.f32 0.0, %v90_v5  ;;  %v93_v8 = vsub.f32 0.0, %v91_v6  ;;  %v88_v20 = vmax.f32 %v86_v15, 0.0  ;;  %v89_v23 = vmax.f32 %v87_v16, 0.0  ;;  %s238_s10 = sshll.u32 %s482_s9, 4  ;;  %s483_s14 = smov [#allocation14]   ;;  %s239_s10 = int_to_ptr.vmem [resolvable:$true] %s238_s10 }
  0x13   :  { %v115_v32 = vmul.f32 %v113_v22, %v83_v4  ;;  %vm178_vm0 = vcmask 0   ;;  %s249_s15 = sshll.u32 %s483_s14, 4  ;;  %s251_s17 = sshll.u32 %s541_s4, 4  ;;  %s250_s15 = int_to_ptr.vmem [resolvable:$true] %s249_s15  ;;  %s252_s17 = int_to_ptr.hbm [resolvable:$true] %s251_s17 }
  0x14   :  { %v94_v9 = vmul.f32 1.442695, %v92_v7  ;;  %v96_v10 = vmul.f32 1.442695, %v93_v8  ;;  %s262_s20 = sshll.u32 %s542_s5, 4  ;;  %s484_s21 = smov [#allocation15]   ;;  %s263_s20 = int_to_ptr.hbm [resolvable:$true] %s262_s20 }
  0x15   :  { %s260_s22 = sshll.u32 %s484_s21, 4  ;;  %s261_s22 = int_to_ptr.vmem [resolvable:$true] %s260_s22 }
  0x16   :  { %307 = vpow2.f32 %v94_v9 }
  0x17   :  { %309 = vpow2.f32 %v96_v10 }
  0x1c   :  { %v308_v11 = vpop.eup %307 }
  0x1d   :  { %v310_v12 = vpop.eup %309  ;;  %v98_v13 = vadd.f32 1.0, %v308_v11 }
  0x1e   :  { %v99_v14 = vadd.f32 1.0, %v310_v12 }
  0x1f   :  { %311 = vlog2.f32 %v98_v13 }
  0x20   :  { %313 = vlog2.f32 %v99_v14 }
  0x25   :  { %v312_v21 = vpop.eup %311 }
  0x26   :  { %v314_v24 = vpop.eup %313  ;;  %v101_v26 = vmul.f32 0.6931472, %v312_v21 }
  0x27   :  { %v103_v28 = vmul.f32 0.6931472, %v314_v24 }
  0x28   :  { %v104_v29 = vadd.f32 %v101_v26, %v88_v20 }
  0x29   :  { %v105_v31 = vadd.f32 %v103_v28, %v89_v23 }
  0x2a   :  { %v106_v33 = vsub.f32 0.0, %v104_v29  ;;  %v120_v34 = vmul.f32 %v118_v25, %v104_v29 }
  0x2b   :  { %v107_v35 = vsub.f32 0.0, %v105_v31  ;;  %v121_v36 = vmul.f32 %v119_v27, %v105_v31 }
  0x2c   :  { %v108_v37 = vmul.f32 1.442695, %v106_v33  ;;  %v122_v38 = vadd.f32 %v120_v34, %v114_v30 }
  0x2d   :  { %v110_v39 = vmul.f32 1.442695, %v107_v35  ;;  %v123_v40 = vadd.f32 %v121_v36, %v115_v32 }
  0x2e   :  { %315 = vpow2.f32 %v108_v37  ;;  %v124_v41 = vsub.f32 0.0, %v122_v38 }
  0x2f   :  { %317 = vpow2.f32 %v110_v39  ;;  %v125_v42 = vsub.f32 0.0, %v123_v40 }
  0x30   :  { %v126_v43 = vmul.f32 1.442695, %v124_v41 }
  0x31   :  { %v128_v44 = vmul.f32 1.442695, %v125_v42 }
  0x32   :  { %319 = vpow2.f32 %v126_v43 }
  0x33   :  { %321 = vpow2.f32 %v128_v44 }
  0x34   :  { %v316_v45 = vpop.eup %315 }
  0x35   :  { %v318_v46 = vpop.eup %317  ;;  %v136_v47 = vmul.f32 %v316_v45, %v84_v0 }
  0x36   :  { %v137_v48 = vmul.f32 %v318_v46, %v85_v1  ;;  %v182_v58 = vadd.f32 %v318_v46, %v316_v45 }
  0x38   :  { %v320_v49 = vpop.eup %319  ;;  %v167_v50 = vadd.f32 %v137_v48, %v136_v47 }
  0x39   :  { %v322_v51 = vpop.eup %321  ;;  %v130_v52 = vsub.f32 1.0, %v320_v49 }
  0x3a   :  { %168 = vadd.xlane.f32.xlu0 %v167_v50  ;;  %v131_v53 = vsub.f32 1.0, %v322_v51 }
  0x3b   :  { %v132_v54 = vmul.f32 %v130_v52, %v130_v52 }
  0x3c   :  { %v133_v55 = vmul.f32 %v131_v53, %v131_v53 }
  0x3d   :  { %v134_v56 = vmul.f32 %v132_v54, %v122_v38 }
  0x3e   :  { %v135_v57 = vmul.f32 %v133_v55, %v123_v40 }
  0x40   :  { %v210_v59 = vadd.f32 %v135_v57, %v134_v56 }
  0x42   :  { %211 = vadd.xlane.f32.xlu1 %v210_v59  ;;  %183 = vadd.xlane.f32.xlu0 %v182_v58 }
  0x84   :  { %v198_v60 = vpop.xlane.xlu1 %197 }
  0x85   :  { %v199_v61 = vrot.slane %v198_v60, 4 }
  0x87   :  { %v200_v1 = vadd.f32 %v199_v61, %v198_v60 }
  0x89   :  { %v201_v4 = vrot.slane %v200_v1, 2 }
  0x8b   :  { %v202_v13 = vadd.f32 %v201_v4, %v200_v1 }
  0x8d   :  { %v203_v18 = vrot.slane %v202_v13, 1 }
  0x8f   :  { %v204_v23 = vadd.f32 %v203_v18, %v202_v13 }
  0xad   :  { %v169_v62 = vpop.xlane.xlu0 %168 }
  0xae   :  { %v170_v63 = vrot.slane %v169_v62, 4 }
  0xb0   :  { %v171_v0 = vadd.f32 %v170_v63, %v169_v62 }
  0xb2   :  { %v172_v2 = vrot.slane %v171_v0, 2 }
  0xb4   :  { %v173_v3 = vadd.f32 %v172_v2, %v171_v0 }
  0xb5   :  { %v212_v5 = vpop.xlane.xlu1 %211  ;;  %v184_v6 = vpop.xlane.xlu0 %183 }
  0xb6   :  { %v213_v7 = vrot.slane %v212_v5, 4  ;;  %v185_v8 = vrot.slane %v184_v6, 4  ;;  %v174_v9 = vrot.slane %v173_v3, 1 }
  0xb8   :  { %v214_v10 = vadd.f32 %v213_v7, %v212_v5  ;;  %v186_v11 = vadd.f32 %v185_v8, %v184_v6  ;;  %v175_v12 = vadd.f32 %v174_v9, %v173_v3 }
  0xba   :  { %v215_v14 = vrot.slane %v214_v10, 2  ;;  %v187_v15 = vrot.slane %v186_v11, 2  ;;  %291 = vpush %v175_v12 }
  0xbc   :  { %v216_v16 = vadd.f32 %v215_v14, %v214_v10  ;;  %v188_v17 = vadd.f32 %v187_v15, %v186_v11 }
  0xbe   :  { %v189_v19 = vrot.slane %v188_v17, 1  ;;  %v217_v20 = vrot.slane %v216_v16, 1 }
  0xc0   :  { %v190_v21 = vadd.f32 %v189_v19, %v188_v17  ;;  %v218_v22 = vadd.f32 %v217_v20, %v216_v16 }
  0xc2   :  { %293 = vpush %v190_v21 }
  0xc3   :  { %295 = vpush %v204_v23 }
  0xc4   :  { %297 = vpush %v218_v22 }
  0xeb   :  { %s292_s8 = spop %291 }
  0xec   :  { %v177_v24 = vstv %s292_s8 }
  0xed   :  { %179 = vst.msk [vmem:[#allocation11] sm:$0x1] %vm178_vm0, %v177_v24 }
  0xee   :  { %232 = dma.vmem_to_hbm [thread:$0]  %s228_s7, 16, %s230_s30, [#allocation8]  }
  0xf3   :  { %s294_s23 = spop %293 }
  0xf4   :  { %v192_v25 = vstv %s294_s23  ;;  %s296_s3 = spop %295 }
  0xf5   :  { %193 = vst.msk [vmem:[#allocation12] sm:$0x1] %vm178_vm0, %v192_v25  ;;  %v206_v26 = vstv %s296_s3  ;;  %s298_s24 = spop %297 }
  0xf6   :  { %207 = vst.msk [vmem:[#allocation14] sm:$0x1] %vm178_vm0, %v206_v26  ;;  %v220_v27 = vstv %s298_s24  ;;  %243 = dma.vmem_to_hbm [thread:$0]  %s239_s10, 16, %s241_s13, [#allocation13]  }
  0xf7   :  { %221 = vst.msk [vmem:[#allocation15] sm:$0x1] %vm178_vm0, %v220_v27  ;;  %254 = dma.vmem_to_hbm [thread:$0]  %s250_s15, 16, %s252_s17, [#allocation13]  }
  0xf8   :  { %265 = dma.vmem_to_hbm [thread:$0]  %s261_s22, 16, %s263_s20, [#allocation16]  }
  0xf9   :  { %471 = dma.done.wait [#allocation8], 16  }
  0xfa   :  { %472 = vsyncadd [#allocation8], 4294967280 }
  0xfb   :  { %473 = dma.done.wait [#allocation13], 32  }
  0xfc   :  { %474 = vsyncadd [#allocation13], 4294967264 }
  0xfd   :  { %475 = dma.done.wait [#allocation16], 16  }
  0xfe   :  { %476 = vsyncadd [#allocation16], 4294967280 }
  0xff   :  { %282 = vsyncpa [#allocation7], 1 }
 0x100   :  { %283 = vsyncpa [#allocation10], 1 }
 0x101   :  { %284 = vsyncpa [#allocation8], 1 }
 0x102   :  { %285 = vsyncpa [#allocation13], 1 }
 0x103   :  { %286 = vsyncpa [#allocation16], 1 }

</bundles_post_ra>
